<compile_context>
chip_gen: v5e
topology: v5e:2x2
jax: 0.10.0
libtpu: 0.0.40
codegen_flags: <defaults>
</compile_context>

<pallas_src>
import jax
import jax.numpy as jnp
from jax.experimental import pallas as pl
from jax.experimental.pallas import tpu as pltpu


# --------------------------------------------------------------------------
# Kernels
# --------------------------------------------------------------------------
def _linear_t_kernel(x_ref, w_ref, b_ref, o_ref):
    """Transposed layout: o[O, TN] = W[O, F] . x[TN, F]^T + b[O, 1]."""
    acc = jax.lax.dot_general(
        w_ref[...],                                   # (O, F)  resident
        x_ref[...],                                   # (TN, F) streamed
        dimension_numbers=(((1,), (1,)), ((), ())),   # contract F on both
        preferred_element_type=jnp.float32,
    )                                                 # (O, TN) nodes on lanes
    o_ref[...] = (acc + b_ref[...]).astype(o_ref.dtype)


def _linear_nat_kernel(x_ref, w_ref, b_ref, o_ref):
    """Natural layout (O >= 128): o[TN, O] = x[TN, F] . W[O, F]^T + b[1, O]."""
    acc = jax.lax.dot_general(
        x_ref[...],                                   # (TN, F) streamed
        w_ref[...],                                   # (O, F)  resident
        dimension_numbers=(((1,), (1,)), ((), ())),   # contract F on both
        preferred_element_type=jnp.float32,
    )                                                 # (TN, O)
    o_ref[...] = (acc + b_ref[...]).astype(o_ref.dtype)


# --------------------------------------------------------------------------
# Tile selection / wrapper
# --------------------------------------------------------------------------
_TARGET_X_BYTES_PER_STEP = 4 << 20   # ~4 MiB of real x traffic per grid step
_X_VMEM_BUDGET_BYTES = 16 << 20      # double-buffered, lane-PADDED x blocks


def _round_up(v, m):
    return ((v + m - 1) // m) * m


def _choose_node_tile(n, f, itemsize):
    """Pick TN: big enough to amortize step overhead, small enough for VMEM."""
    if n <= 128:
        return n                                   # single full-extent block
    f_pad = _round_up(max(f, 1), 128)              # lane padding in VMEM
    tn = _TARGET_X_BYTES_PER_STEP // max(f * itemsize, 1)
    tn = min(tn, _X_VMEM_BUDGET_BYTES // (2 * f_pad * itemsize))
    # Keep >= ~8 grid steps so v7x's two TensorCores both get node tiles and
    # the software pipeline has iterations to overlap.
    tn = min(tn, _round_up(pl.cdiv(n, 8), 128))
    # TN < N must be a multiple of 128: it is the output's lane dim and the
    # x block's sublane dim.
    tn = max(128, (tn // 128) * 128)
    return n if tn >= n else tn


def linear_model_forward(graph, x, weight, bias, *, block_nodes=None,
                         min_pallas_bytes=2 << 20):
    """Pallas equivalent of LinearModel.forward(graph, x)."""
    del graph  # graph-agnostic model: graph is unused
    n, f = x.shape
    o, f_w = weight.shape
    assert f == f_w, (f, f_w)
    itemsize = jnp.dtype(x.dtype).itemsize

    # Tiny problems: the pallas_call boundary + per-step overhead beats the
    # FLOPs; let XLA fuse x @ W.T + b instead.
    if n * f * itemsize < min_pallas_bytes:
        out = x @ weight.T + bias
        return jnp.squeeze(out, axis=1) if o == 1 else out

    # Node-tile size (multiple of 128, or the full extent).
    if block_nodes is None:
        tn = _choose_node_tile(n, f, itemsize)
    else:
        tn = n if block_nodes >= n else max(128, (block_nodes // 128) * 128)
    grid = (pl.cdiv(n, tn),)                        # no jnp.pad: ragged tail ok

    natural = o >= 128                              # natural layout already lane-dense

    # VMEM accounting with lane/sublane padding (double-buffered blocks).
    f_pad = _round_up(f, 128)
    o_sub = _round_up(o, 8)
    x_blk = tn * f_pad * itemsize
    w_blk = o_sub * f_pad * itemsize
    if natural:
        out_blk = _round_up(tn, 8) * _round_up(o, 128) * itemsize
        b_blk = 8 * _round_up(o, 128) * itemsize
    else:
        out_blk = o_sub * _round_up(tn, 128) * itemsize
        b_blk = o_sub * 128 * itemsize
    vmem_need = 2 * (x_blk + out_blk + w_blk + b_blk) + (4 << 20)  # +slack
    compiler_params = pltpu.CompilerParams(
        dimension_semantics=("parallel",),          # megacore split on v7x
        vmem_limit_bytes=int(min(max(vmem_need, 24 << 20), 48 << 20)),
    )
    cost = pl.CostEstimate(
        flops=2 * n * f * o,
        transcendentals=0,
        bytes_accessed=itemsize * (n * f + o * f + n * o),
    )

    if natural:
        out = pl.pallas_call(
            _linear_nat_kernel,
            out_shape=jax.ShapeDtypeStruct((n, o), x.dtype),
            grid=grid,
            in_specs=[
                pl.BlockSpec((tn, f), lambda i: (i, 0)),   # x: stream tiles
                pl.BlockSpec((o, f), lambda i: (0, 0)),    # W: resident
                pl.BlockSpec((1, o), lambda i: (0, 0)),    # b: resident
            ],
            out_specs=pl.BlockSpec((tn, o), lambda i: (i, 0)),
            compiler_params=compiler_params,
            cost_estimate=cost,
        )(x, weight, bias.reshape(1, o))
        return out                                  # squeeze(1) is a no-op

    out_t = pl.pallas_call(
        _linear_t_kernel,
        out_shape=jax.ShapeDtypeStruct((o, n), x.dtype),
        grid=grid,
        in_specs=[
            pl.BlockSpec((tn, f), lambda i: (i, 0)),       # x: stream tiles
            pl.BlockSpec((o, f), lambda i: (0, 0)),        # W: resident
            pl.BlockSpec((o, 1), lambda i: (0, 0)),        # b: resident
        ],
        out_specs=pl.BlockSpec((o, tn), lambda i: (0, i)),  # lane-dense output
        compiler_params=compiler_params,
        cost_estimate=cost,
    )(x, weight, bias.reshape(o, 1))

    if o == 1:
        return out_t[0]              # (N,)  == torch .squeeze(1)
    return out_t.T                   # small 1 < O < 128: un-transpose in wrapper


# --------------------------------------------------------------------------
# Demo / self-test
# --------------------------------------------------------------------------
if __name__ == "__main__":
    key = jax.random.PRNGKey(0)
    kx, kw, kb = jax.random.split(key, 3)

    # Shapes implied by the module: [num_nodes, features_dim] input and
    # output_dim = 1 (forward's .squeeze(1) targets one value per node).
    num_nodes, features_dim, output_dim = 512, 32, 1

    x = jax.random.normal(kx, (num_nodes, features_dim), dtype=jnp.float32)
    bound = 1.0 / jnp.sqrt(jnp.float32(features_dim))
    weight = jax.random.uniform(kw, (output_dim, features_dim),
                                dtype=jnp.float32, minval=-bound, maxval=bound)
    bias = jax.random.uniform(kb, (output_dim,), dtype=jnp.float32,
                              minval=-bound, maxval=bound)

    # 1) Pallas transposed-output path (forced past the bytes threshold so the
    #    kernel actually runs at this demo size): TN=128 -> 4 grid steps.
    out = linear_model_forward(None, x, weight, bias, min_pallas_bytes=0)
    out = jax.block_until_ready(out)
    ref = jnp.squeeze(x @ weight.T + bias, axis=1)
    assert out.shape == ref.shape == (num_nodes,)
    assert jnp.allclose(out, ref, atol=1e-5, rtol=1e-5)

    # 2) Wide-output natural-layout path (O >= 128): no wrapper transpose.
    o2 = 128
    w2 = jax.random.uniform(kw, (o2, features_dim), dtype=jnp.float32,
                            minval=-bound, maxval=bound)
    b2 = jax.random.uniform(kb, (o2,), dtype=jnp.float32,
                            minval=-bound, maxval=bound)
    out2 = jax.block_until_ready(
        linear_model_forward(None, x, w2, b2, min_pallas_bytes=0))
    ref2 = x @ w2.T + b2
    assert out2.shape == ref2.shape == (num_nodes, o2)
    assert jnp.allclose(out2, ref2, atol=1e-4, rtol=1e-4)

    # 3) Bytes-based fallback (64 KiB of x < 2 MiB threshold -> fused XLA dot).
    out3 = jax.block_until_ready(linear_model_forward(None, x, weight, bias))
    assert out3.shape == (num_nodes,)
    assert jnp.allclose(out3, ref, atol=1e-5, rtol=1e-5)

    print("KERNEL_OK")
</pallas_src>

<mosaic_0001>
module attributes {stable_mosaic.version = 11 : i64} {
  func.func @_linear_t_kernel(%arg0: i32, %arg1: memref<128x32xf32, #tpu.memory_space<vmem>>, %arg2: memref<1x32xf32, #tpu.memory_space<vmem>>, %arg3: memref<1x1xf32, #tpu.memory_space<vmem>>, %arg4: memref<1x128xf32, #tpu.memory_space<vmem>>) attributes {dimension_semantics = [#tpu.dimension_semantics<parallel>], iteration_bounds = array<i64: 4>, scalar_prefetch = 0 : i64, scratch_operands = 0 : i64, tpu.core_type = #tpu.core_type<tc>, window_params = [{transform_indices = @transform_0, window_bounds = array<i64: 128, 32>}, {pipeline_mode = #tpu.pipeline_mode<synchronous>, transform_indices = @transform_1, window_bounds = array<i64: 1, 32>}, {pipeline_mode = #tpu.pipeline_mode<synchronous>, transform_indices = @transform_2, window_bounds = array<i64: 1, 1>}, {transform_indices = @transform_3, window_bounds = array<i64: 1, 128>}]} {
    %c0 = arith.constant 0 : index
    %c0_0 = arith.constant 0 : index
    %0 = vector.load %arg2[%c0, %c0_0] : memref<1x32xf32, #tpu.memory_space<vmem>>, vector<1x32xf32>
    %c0_1 = arith.constant 0 : index
    %c0_2 = arith.constant 0 : index
    %1 = vector.load %arg1[%c0_1, %c0_2] : memref<128x32xf32, #tpu.memory_space<vmem>>, vector<128x32xf32>
    %cst = arith.constant dense<0.000000e+00> : vector<1x128xf32>
    %2 = tpu.matmul %0, %1, %cst {dimension_numbers = #tpu.dot_dimension_numbers<[1], [1], [0], [0], [0, 0, 1, 0], [], []>} : vector<1x32xf32>, vector<128x32xf32>, vector<1x128xf32> -> vector<1x128xf32>
    %c0_3 = arith.constant 0 : index
    %c0_4 = arith.constant 0 : index
    %3 = vector.load %arg3[%c0_3, %c0_4] : memref<1x1xf32, #tpu.memory_space<vmem>>, vector<1x1xf32>
    %4 = vector.broadcast %3 : vector<1x1xf32> to vector<1x128xf32>
    %5 = arith.addf %2, %4 : vector<1x128xf32>
    %c0_5 = arith.constant 0 : index
    %c0_6 = arith.constant 0 : index
    %6 = vector.load %arg4[%c0_5, %c0_6] : memref<1x128xf32, #tpu.memory_space<vmem>>, vector<1x128xf32>
    tpu.vector_store %arg4[%c0_5, %c0_6], %5 {strides = array<i32>} : memref<1x128xf32, #tpu.memory_space<vmem>>, vector<1x128xf32>,
    return
  }
  func.func @transform_0(%arg0: i32) -> (i32, i32) {
    %c0_i32 = arith.constant 0 : i32
    %c0_i32_0 = arith.constant 0 : i32
    return %arg0, %c0_i32 : i32, i32
  }
  func.func @transform_1(%arg0: i32) -> (i32, i32) {
    %c0_i32 = arith.constant 0 : i32
    %c0_i32_0 = arith.constant 0 : i32
    %c0_i32_1 = arith.constant 0 : i32
    return %c0_i32, %c0_i32_0 : i32, i32
  }
  func.func @transform_2(%arg0: i32) -> (i32, i32) {
    %c0_i32 = arith.constant 0 : i32
    %c0_i32_0 = arith.constant 0 : i32
    %c0_i32_1 = arith.constant 0 : i32
    return %c0_i32, %c0_i32_0 : i32, i32
  }
  func.func @transform_3(%arg0: i32) -> (i32, i32) {
    %c0_i32 = arith.constant 0 : i32
    %c0_i32_0 = arith.constant 0 : i32
    return %c0_i32, %arg0 : i32, i32
  }
}

</mosaic_0001>

<bundles_post_ra>
// kernel: tpu_custom_call.1
= control target key start
LH: loop header
LB: loop body
LE: loop exit
PB: predicated region body
PF: predicated region fallthrough
CT: control target
= control target key end

     0   :  { %s613_s0 = inlined_call_operand.vmem [shape: f32[512,32], index: 0, kind: input, shape index: {}]   ;;  %s614_s1 = inlined_call_operand.vmem [shape: f32[1,32], index: 1, kind: input, shape index: {}]   ;;  %s615_s2 = inlined_call_operand.<no memory space> [shape: f32[1,1], index: 2, kind: input, shape index: {}]   ;;  %s616_s3 = inlined_call_operand.hbm [shape: f32[1,512], index: 3, kind: output, shape index: {}]  }
   0x1   :  { %v8_v0 = vstv %s615_s2 }
   0x2   :  { %9 = vst [vmem:[#allocation2] sm:$0x1] %v8_v0 }
   0x3   :  { %10 = vsyncpa [#allocation4], 0 }
   0x4   :  { %12 = vsyncpa [#allocation4 + $0x1], 0  ;;  %s491_s14 = smov 0   ;;  %s493_s15 = smov 0  }
   0x5   :  { %s495_s16 = smov 0   ;;  %s497_s17 = smov 0  }
   0x6 LB: > { %s512_s2 = sadd.s32 4294967295, %s465_s17   ;;  %s337_s18 = sadd.s32 4294967294, %s465_s17   ;;  %s465_s17 = sphi %s497_s17, %s622_s17   ;;  %s461_s16 = sphi %s495_s16, %s621_s16   ;;  %s457_s15 = sphi %s493_s15, %s620_s15   ;;  %s453_s14 = sphi %s491_s14, %s619_s14  }
   0x7   : > { %s516_s19 = sadd.s32 1, %s465_s17   ;;  %s93_s20 = sadd.s32 1, %s461_s16 }
   0x8   : > { %s90_s21 = ssub.s32 %s465_s17, %s516_s19  ;;  %p103_p0 = scmp.ne.s32.totalorder %s461_s16, %s457_s15 }
   0x9   : > { %p91_p1 = scmp.eq.s32.totalorder %s90_s21, 0  ;;  %p104_p2 = scmp.eq.s32.totalorder %s512_s2, 3 }
   0xa   : > { %p109_p3 = scmp.ne.s32.totalorder %s457_s15, %s453_s14  ;;  %p110_p4 = scmp.eq.s32.totalorder %s337_s18, 3 }
   0xb   : > { %s527_s22 = scalar_select %p91_p1, %s461_s16, %s93_s20  }
   0xc   : > { %p529_p5 = por %p104_p2, %p103_p0  ;;  %p533_p6 = por %p110_p4, %p109_p3 }
   0xd   : > { %p340_p7 = scmp.ge.s32.totalorder %s465_s17, 1  ;;  %p143_p8 = scmp.lt.s32.totalorder %s465_s17, 5 }
   0xf   : > { %p144_p9 = pnand %p340_p7, %p143_p8 }
  0x10   : > { %s341_s25 = sshll.u32 (!%p144_p9), %s512_s2, 4  ;;  %s164_s5 = sand.u32 (!%p144_p9), 1, %s457_s15  }
  0x11   : > { %147 = sbr.rel (%p144_p9) target bundleno = 220 (0xdc), region = 32  ;;  %p167_p10 = scmp.lt.s32.totalorder (!%p144_p9), %s341_s25, 63 }
  0x12   : > { %s278_s8 = scalar_lea.hbm (!%p144_p9), %s616_s3, %s512_s2  ;;  %s165_s9 = scalar_lea.vmem (!%p144_p9), [#allocation3], %s164_s5 }
  0x13   : > { %s280_s10 = sshll.u32 (!%p144_p9), %s165_s9, 4  ;;  %s282_s11 = sshll.u32 (!%p144_p9), %s278_s8, 4  ;;  %s281_s10 = int_to_ptr.vmem [resolvable:$true] %s280_s10  ;;  %s283_s11 = int_to_ptr.hbm [resolvable:$true] %s282_s11 }
  0x14   : > { %s270_s12 = scalar_lea.sflag (!%p144_p9), [#allocation4], %s164_s5  ;;  %s417_s13 = sshra.s32 (!%p144_p9), %s283_s11, 4  ;;  %s418_s13 = int_to_ptr.hbm [resolvable:$true] %s417_s13 }
  0x15   : > { %s419_s18 = scalar_lea.hbm (!%p144_p9), %s418_s13, 1  ;;  %s423_s2 = scalar_lea.hbm (!%p144_p9), %s616_s3, 4 }
  0x16   : > { %s624_s25 = smov (!%p167_p10, %s341_s25), 63  ;;  %vm196_vm0 = vcmask 261120   ;;  %v189_v10 = vld [vmem:[#allocation2] sm:$0x1]  ;;  %v467_v11 = vmov 0   ;;  %p420_p11 = scmp.ne.s32.totalorder %s418_s13, %s419_s18 }
  0x17   : > { %s342_s26 = sshll.u32 %s624_s25, 3  ;;  %402 = vset.pattern.permute.xlu0 %v467_v11  ;;  %v172_v19 = vld [vmem:[%s614_s1] sm:$0x1]  ;;  %p424_p0 = scmp.lt.s32.totalorder %s418_s13, %s616_s3 }
  0x18   : > { %s543_s29 = scalar_lea.vmem %s613_s0, %s342_s26  ;;  %192 = vperm.xlu0 %402, %v189_v10   ;;  %p421_p12 = pnand %p420_p11, %p529_p5 }
  0x19   : > { %v188_v1 = vld [vmem:[%s543_s29 + $0x78] sm:$0xff]  ;;  %v187_v2 = vld [vmem:[%s543_s29 + $0x70] sm:$0xff]  ;;  %v186_v3 = vld [vmem:[%s543_s29 + $0x68] sm:$0xff]  ;;  %p425_p1 = scmp.lt.s32.totalorder %s423_s2, %s419_s18 }
  0x1a   : > { %343 = vmatpush.xpose.msk.msra.mxu0 %vm196_vm0, %v188_v1  ;;  %v185_v4 = vld [vmem:[%s543_s29 + $0x60] sm:$0xff]  ;;  %v184_v5 = vld [vmem:[%s543_s29 + $0x58] sm:$0xff]  ;;  %v183_v6 = vld [vmem:[%s543_s29 + $0x50] sm:$0xff]  ;;  %p422_p13 = pneg %p421_p12 }
  0x1b   : > { %v182_v7 = vld [vmem:[%s543_s29 + $0x48] sm:$0xff]  ;;  %v181_v8 = vld [vmem:[%s543_s29 + $0x40] sm:$0xff]  ;;  %v180_v9 = vld [vmem:[%s543_s29 + $0x38] sm:$0xff]  ;;  %p426_p2 = por %p425_p1, %p424_p0 }
  0x1c   : > { %v179_v12 = vld [vmem:[%s543_s29 + $0x30] sm:$0xff]  ;;  %v178_v13 = vld [vmem:[%s543_s29 + $0x28] sm:$0xff]  ;;  %v177_v14 = vld [vmem:[%s543_s29 + $0x20] sm:$0xff] }
  0x1d   : > { %v176_v15 = vld [vmem:[%s543_s29 + $0x18] sm:$0xff]  ;;  %v175_v16 = vld [vmem:[%s543_s29 + $0x10] sm:$0xff]  ;;  %v174_v17 = vld [vmem:[%s543_s29 + $0x8] sm:$0xff]  ;;  %p427_p3 = pnand %p426_p2, %p422_p13 }
  0x1e   : > { %344 = vmatpush.xpose.msk.msra.mxu0 %vm196_vm0, %v187_v2  ;;  %v173_v18 = vld [vmem:[%s543_s29] sm:$0xff] }
  0x22   : > { %345 = vmatpush.xpose.msk.msra.mxu0 %vm196_vm0, %v186_v3 }
  0x26   : > { %346 = vmatpush.xpose.msk.msra.mxu0 %vm196_vm0, %v185_v4 }
  0x2a   : > { %347 = vmatpush.xpose.msk.msra.mxu0 %vm196_vm0, %v184_v5 }
  0x2e   : > { %348 = vmatpush.xpose.msk.msra.mxu0 %vm196_vm0, %v183_v6 }
  0x32   : > { %349 = vmatpush.xpose.msk.msra.mxu0 %vm196_vm0, %v182_v7 }
  0x36   : > { %350 = vmatpush.xpose.msk.msra.mxu0 %vm196_vm0, %v181_v8 }
  0x3a   : > { %351 = vmatpush.xpose.msk.msra.mxu0 %vm196_vm0, %v180_v9 }
  0x3e   : > { %352 = vmatpush.xpose.msk.msra.mxu0 %vm196_vm0, %v179_v12 }
  0x42   : > { %353 = vmatpush.xpose.msk.msra.mxu0 %vm196_vm0, %v178_v13 }
  0x46   : > { %354 = vmatpush.xpose.msk.msra.mxu0 %vm196_vm0, %v177_v14 }
  0x4a   : > { %355 = vmatpush.xpose.msk.msra.mxu0 %vm196_vm0, %v176_v15 }
  0x4e   : > { %356 = vmatpush.xpose.msk.msra.mxu0 %vm196_vm0, %v175_v16 }
  0x52   : > { %357 = vmatpush.xpose.msk.msra.mxu0 %vm196_vm0, %v174_v17 }
  0x56   : > { %358 = vmatpush.xpose.msk.msra.mxu0 %vm196_vm0, %v173_v18 }
  0x59   : > { %359 = vmatmul.msk.f32.vlgmr.msra.gmra.mxu0 %vm196_vm0, %v172_v19 }
  0x8a   : > { %v193_v20 = vpop.permute.xlu0 %192 }
  0x8b   : > { %v195_v21 = vperm.slane %v193_v20, 0 }
  0xd6   : > { %v265_v22 = vpop.f32.mrf.mxu0 }
  0xd7   : > { %v266_v23 = vadd.f32 %v265_v22, %v195_v21 }
  0xd9   : > { %268 = vst [vmem:[%s165_s9] sm:$0x1] %v266_v23 }
  0xda   : > { %430 = shalt.err (!%p427_p3)
}
  0xdb   : > { %362 = dma.vmem_to_hbm [thread:$0]  (%p529_p5), %s281_s10, 16, %s283_s11, %s270_s12  }
  0xdc PF: > { %p368_p4 = scmp.ge.s32.totalorder %s465_s17, 2  ;;  %s294_s27 = sand.u32 1, %s453_s14  }
  0xdd   : > { %s295_s28 = scalar_lea.sflag [#allocation4], %s294_s27 }
  0xde   : > { %p365_p7 = pnand %p368_p4, %p533_p6 }
  0xe0   : > { %p366_p8 = pneg %p365_p7 }
  0xe2   : > { %448 = dma.done.wait (%p366_p8), %s295_s28, 16  }
  0xe3   : > { %450 = vsyncadd (%p366_p8), %s295_s28, 4294967280  ;;  %p15_p9 = scmp.ge.s32.totalorder %s516_s19, 6   ;;  %s619_s14 = smov %s457_s15 }
  0xe4   : > { %s620_s15 = smov %s461_s16  ;;  %s621_s16 = smov %s527_s22 }
  0xe5   : > { %s622_s17 = smov %s516_s19  ;;  %17 = sbr.rel (!%p15_p9) target bundleno = 6 (0x6), region = 67 }
  0xea   :  { %300 = vsyncpa [#allocation4], 1 }
  0xeb   :  { %302 = vsyncpa [#allocation4 + $0x1], 1 }

</bundles_post_ra>
